<compile_context>
chip_gen: v5e
topology: v5e:2x2
jax: 0.10.0
libtpu: 0.0.40
codegen_flags: <defaults>
</compile_context>

<pallas_src>
import functools
import math

import jax
import jax.numpy as jnp
from jax import lax
from jax.experimental import pallas as pl
from jax.experimental.pallas import tpu as pltpu

_EPS = 1e-8  # clamp(min=eps) from cosine_sim (applied per-norm; differs from
             # torch only for exactly-zero rows of x or w).


def _round_up(x, m):
    return pl.cdiv(x, m) * m


def _acos_fast(c):
    """A&S 4.4.45: acos(x) ~ sqrt(1-x)*(a0+a1*x+a2*x^2+a3*x^3), |err| <~ 1e-4.
    One sqrt, no divides, 3 Horner steps.  |c| > 1 -> NaN (torch.acos parity)."""
    a = jnp.abs(c)
    p = -0.0187293
    p = p * a + 0.0742610
    p = p * a - 0.2121144
    p = p * a + 1.5707288
    r = jnp.sqrt(1.0 - a) * p
    return jnp.where(c < 0.0, math.pi - r, r)


def _acos_precise(c):
    """A&S 4.4.46 (7 coefficients), |err| ~ 2e-8."""
    a = jnp.abs(c)
    p = -0.0012624911
    p = p * a + 0.0066700901
    p = p * a - 0.0170881256
    p = p * a + 0.0308918810
    p = p * a - 0.0501743046
    p = p * a + 0.0889789874
    p = p * a - 0.2145988016
    p = p * a + 1.5707963050
    r = jnp.sqrt(1.0 - a) * p
    return jnp.where(c < 0.0, math.pi - r, r)


def _make_kernel(acos_fn, mxu_dtype, clamp_cosine):
    def kernel(rxn_ref, x_ref, w_ref, o_ref, rwn_ref):
        bi = pl.program_id(1)  # batch-tile index (inner grid axis)

        # Per-class inverse norms: computed once per class tile on the
        # VMEM-resident weight tile, reused for every batch tile.
        @pl.when(bi == 0)
        def _():
            wf = w_ref[...].astype(jnp.float32)
            ssq = jnp.sum(wf * wf, axis=1)                                # (bn,)
            rwn_ref[...] = lax.rsqrt(jnp.maximum(ssq, _EPS * _EPS))[None, :]

        x = x_ref[...]                     # (bm, K)
        w = w_ref[...]                     # (bn, K)  resident across batch tiles
        if mxu_dtype is not None:
            x = x.astype(mxu_dtype)
            w = w.astype(mxu_dtype)

        # ip = x @ w.T on the MXU (same contraction pattern as flash attention's
        # q @ k^T), f32 accumulation regardless of input dtype.
        ip = lax.dot_general(x, w, (((1,), (1,)), ((), ())),
                             preferred_element_type=jnp.float32)          # (bm, bn)

        cosine = ip * rxn_ref[...] * rwn_ref[...]
        if clamp_cosine:
            cosine = jnp.clip(cosine, -1.0, 1.0)
        o_ref[...] = acos_fn(cosine).astype(o_ref.dtype)

    return kernel


def _vmem_budget_bytes():
    """Generation-aware VMEM budget: ~80% of physical per-core VMEM."""
    try:
        cap = pltpu.get_tpu_info().vmem_capacity_bytes
    except Exception:
        cap = 64 * 1024 * 1024  # conservative fallback: v7x per-TC physical VMEM
    return int(cap * 0.8)       # headroom for Mosaic internal scratch / semaphores


@functools.partial(
    jax.jit,
    static_argnames=("s", "m", "block_b", "block_n", "out_dtype",
                     "mxu_bf16", "high_precision_acos", "clamp_cosine"),
)
def arcface_forward(x, weight, label=None, *, s=30.0, m=0.4,
                    block_b=None, block_n=None, out_dtype=jnp.float32,
                    mxu_bf16=False, high_precision_acos=False,
                    clamp_cosine=False):
    """Pallas ArcFace forward.  `label`, `s`, `m` are unused, matching the
    PyTorch forward which discards the add/cos/mul results."""
    del label, s, m
    B, K = x.shape
    N, K2 = weight.shape
    assert K == K2

    x_item = jnp.dtype(x.dtype).itemsize
    w_item = jnp.dtype(weight.dtype).itemsize
    o_item = jnp.dtype(out_dtype).itemsize
    sub = {4: 8, 2: 16, 1: 32}.get(x_item, 8)   # sublane packing for x's dtype

    budget = _vmem_budget_bytes()

    # --- batch tile: whole (sublane-rounded) batch when it fits -> x fetched once.
    if block_b is None:
        block_b = min(_round_up(B, sub), 512)
        while block_b > sub and 2 * block_b * K * x_item > budget // 3:
            block_b = max(sub, _round_up(block_b // 2, sub))

    # --- class tile: largest multiple of 128 that fits the double-buffered budget.
    if block_n is None:
        fixed = 2 * block_b * K * x_item + 2 * block_b * 4      # x tile + 1/||x|| tile
        per_n = 2 * K * w_item + 2 * block_b * o_item + 32      # w + out tiles + scratch
        max_n = max((budget - fixed) // per_n, 128)
        block_n = int(min(4096, (max_n // 128) * 128))
        block_n = max(block_n, 128)
    # Keep class tiles inside the array (ragged LAST tile is fine); for small N
    # use the full dim so no weight padding is ever required.
    block_n = min(block_n, (N // 128) * 128) if N >= 128 else N

    # Pad only the (small) activation, and only when a single batch tile is
    # wider than B.  The weight matrix is never padded or copied.
    Bp = B
    if block_b > B:
        Bp = block_b
        x = jnp.pad(x, ((0, Bp - B), (0, 0)))

    grid = (pl.cdiv(N, block_n), pl.cdiv(Bp, block_b))  # class outer, batch inner

    # Hoisted per-row inverse norms 1/||x|| (tiny; fuses under jit).  Padded
    # all-zero rows clamp to 1/eps but are sliced off below.
    xf = x.astype(jnp.float32)
    rxn = lax.rsqrt(jnp.maximum(jnp.sum(xf * xf, axis=1, keepdims=True),
                                _EPS * _EPS))                            # (Bp, 1)

    cost = pl.CostEstimate(
        flops=2 * B * N * K,
        transcendentals=B * N + B + N,   # acos sqrt per output + per-row rsqrts
        bytes_accessed=B * K * x_item + N * K * w_item + B * N * o_item,
    )

    kernel = _make_kernel(
        _acos_precise if high_precision_acos else _acos_fast,
        jnp.bfloat16 if mxu_bf16 else None,
        clamp_cosine,
    )

    out = pl.pallas_call(
        kernel,
        out_shape=jax.ShapeDtypeStruct((Bp, N), out_dtype),
        grid_spec=pltpu.PrefetchScalarGridSpec(
            num_scalar_prefetch=0,
            grid=grid,
            in_specs=[
                pl.BlockSpec((block_b, 1), lambda ni, bi: (bi, 0)),   # 1/||x||
                pl.BlockSpec((block_b, K), lambda ni, bi: (bi, 0)),   # x tile
                pl.BlockSpec((block_n, K), lambda ni, bi: (ni, 0)),   # w tile (resident over bi)
            ],
            out_specs=pl.BlockSpec((block_b, block_n), lambda ni, bi: (bi, ni)),
            scratch_shapes=[pltpu.VMEM((1, block_n), jnp.float32)],   # 1/||w|| per class tile
        ),
        compiler_params=pltpu.CompilerParams(
            dimension_semantics=("parallel", "arbitrary"),
            vmem_limit_bytes=budget,
        ),
        cost_estimate=cost,
    )(rxn, x, weight)

    if Bp != B:
        out = out[:B]
    return out


def arcface_ref(x, w, eps=_EPS):
    """Pure-JAX reference of the PyTorch module's actual return value."""
    ip = x @ w.T
    w1 = jnp.linalg.norm(x, axis=1)
    w2 = jnp.linalg.norm(w, axis=1)
    cosine = ip / jnp.maximum(jnp.outer(w1, w2), eps)
    return jnp.arccos(cosine)


if __name__ == "__main__":
    B, in_features, out_features = 8, 64, 32
    s, m = 30.0, 0.4

    key = jax.random.PRNGKey(0)
    k_x, k_lbl, k_w = jax.random.split(key, 3)

    x = jax.random.normal(k_x, (B, in_features), jnp.float32)
    label = jax.random.randint(k_lbl, (B,), 0, out_features)  # unused (as in PyTorch forward)

    # nn.init.xavier_uniform_ on weight of shape (out_features, in_features)
    bound = math.sqrt(6.0 / (in_features + out_features))
    weight = jax.random.uniform(
        k_w, (out_features, in_features), jnp.float32, minval=-bound, maxval=bound
    )

    ref = arcface_ref(x, weight)

    # High-precision acos path (polynomial error ~2e-8).
    out_hp = jax.block_until_ready(
        arcface_forward(x, weight, label, s=s, m=m, high_precision_acos=True))
    assert out_hp.shape == (B, out_features) and out_hp.dtype == jnp.float32
    err_hp = float(jnp.max(jnp.abs(out_hp - ref)))
    assert err_hp < 1e-4, f"high-precision path error: {err_hp}"

    # Default fast acos path (A&S 4.4.45).
    out = jax.block_until_ready(arcface_forward(x, weight, label, s=s, m=m))
    err = float(jnp.max(jnp.abs(out - ref)))
    assert out.shape == (B, out_features) and err < 5e-4, f"fast path error: {err}"

    # Ragged class tiles (N not a multiple of 128), multi-step grid, no W padding.
    B2, K2, N2 = 24, 96, 200
    x2 = jax.random.normal(jax.random.PRNGKey(1), (B2, K2), jnp.float32)
    w2 = jax.random.normal(jax.random.PRNGKey(2), (N2, K2), jnp.float32) * 0.1
    out2 = jax.block_until_ready(arcface_forward(x2, w2, block_b=8, block_n=128))
    err2 = float(jnp.max(jnp.abs(out2 - arcface_ref(x2, w2))))
    assert out2.shape == (B2, N2) and err2 < 5e-4, f"ragged-tile path error: {err2}"

    # Odd batch size (x-only sublane padding) with default tile selection.
    B3, K3, N3 = 10, 64, 160
    x3 = jax.random.normal(jax.random.PRNGKey(3), (B3, K3), jnp.float32)
    w3 = jax.random.normal(jax.random.PRNGKey(4), (N3, K3), jnp.float32) * 0.1
    out3 = jax.block_until_ready(arcface_forward(x3, w3))
    err3 = float(jnp.max(jnp.abs(out3 - arcface_ref(x3, w3))))
    assert out3.shape == (B3, N3) and err3 < 5e-4, f"odd-batch path error: {err3}"

    print("KERNEL_OK")
</pallas_src>

<mosaic_0001>
module attributes {stable_mosaic.version = 11 : i64} {
  func.func @kernel(%arg0: i32, %arg1: i32, %arg2: memref<8x1xf32, #tpu.memory_space<vmem>>, %arg3: memref<8x64xf32, #tpu.memory_space<vmem>>, %arg4: memref<32x64xf32, #tpu.memory_space<vmem>>, %arg5: memref<8x32xf32, #tpu.memory_space<vmem>>, %arg6: memref<1x32xf32, #tpu.memory_space<vmem>>) attributes {dimension_semantics = [#tpu.dimension_semantics<parallel>, #tpu.dimension_semantics<arbitrary>], iteration_bounds = array<i64: 1, 1>, scalar_prefetch = 0 : i64, scratch_operands = 1 : i64, tpu.core_type = #tpu.core_type<tc>, window_params = [{transform_indices = @transform_0, window_bounds = array<i64: 8, 1>}, {transform_indices = @transform_1, window_bounds = array<i64: 8, 64>}, {transform_indices = @transform_2, window_bounds = array<i64: 32, 64>}, {transform_indices = @transform_3, window_bounds = array<i64: 8, 32>}]} {
    %c0_i32 = arith.constant 0 : i32
    %0 = arith.cmpi eq, %arg1, %c0_i32 : i32
    %1 = arith.extui %0 : i1 to i32
    %c0_i32_0 = arith.constant 0 : i32
    %2 = arith.cmpi ne, %1, %c0_i32_0 : i32
    scf.if %2 {
      %c0_21 = arith.constant 0 : index
      %c0_22 = arith.constant 0 : index
      %45 = vector.load %arg4[%c0_21, %c0_22] : memref<32x64xf32, #tpu.memory_space<vmem>>, vector<32x64xf32>
      %46 = arith.mulf %45, %45 : vector<32x64xf32>
      %cst_23 = arith.constant dense<0.000000e+00> : vector<32xf32>
      %47 = vector.multi_reduction <add>, %46, %cst_23 [1] : vector<32x64xf32> to vector<32xf32>
      %cst_24 = arith.constant 1.000000e-16 : f32
      %48 = vector.broadcast %cst_24 : f32 to vector<32xf32>
      %49 = arith.maximumf %47, %48 : vector<32xf32>
      %50 = math.rsqrt %49 : vector<32xf32>
      %51 = vector.shape_cast %50 : vector<32xf32> to vector<1x32xf32>
      %c0_25 = arith.constant 0 : index
      %c0_26 = arith.constant 0 : index
      %52 = vector.load %arg6[%c0_25, %c0_26] : memref<1x32xf32, #tpu.memory_space<vmem>>, vector<1x32xf32>
      tpu.vector_store %arg6[%c0_25, %c0_26], %51 {strides = array<i32>} : memref<1x32xf32, #tpu.memory_space<vmem>>, vector<1x32xf32>,
    } else {
    }
    %c0 = arith.constant 0 : index
    %c0_1 = arith.constant 0 : index
    %3 = vector.load %arg3[%c0, %c0_1] : memref<8x64xf32, #tpu.memory_space<vmem>>, vector<8x64xf32>
    %c0_2 = arith.constant 0 : index
    %c0_3 = arith.constant 0 : index
    %4 = vector.load %arg4[%c0_2, %c0_3] : memref<32x64xf32, #tpu.memory_space<vmem>>, vector<32x64xf32>
    %cst = arith.constant dense<0.000000e+00> : vector<8x32xf32>
    %5 = tpu.matmul %3, %4, %cst {dimension_numbers = #tpu.dot_dimension_numbers<[1], [1], [0], [0], [0, 0, 1, 0], [], []>} : vector<8x64xf32>, vector<32x64xf32>, vector<8x32xf32> -> vector<8x32xf32>
    %c0_4 = arith.constant 0 : index
    %c0_5 = arith.constant 0 : index
    %6 = vector.load %arg2[%c0_4, %c0_5] : memref<8x1xf32, #tpu.memory_space<vmem>>, vector<8x1xf32>
    %7 = vector.broadcast %6 : vector<8x1xf32> to vector<8x32xf32>
    %8 = arith.mulf %5, %7 : vector<8x32xf32>
    %c0_6 = arith.constant 0 : index
    %c0_7 = arith.constant 0 : index
    %9 = vector.load %arg6[%c0_6, %c0_7] : memref<1x32xf32, #tpu.memory_space<vmem>>, vector<1x32xf32>
    %10 = vector.broadcast %9 : vector<1x32xf32> to vector<8x32xf32>
    %11 = arith.mulf %8, %10 : vector<8x32xf32>
    %12 = math.absf %11 : vector<8x32xf32>
    %cst_8 = arith.constant -0.0012624911 : f32
    %13 = vector.broadcast %cst_8 : f32 to vector<8x32xf32>
    %14 = arith.mulf %13, %12 : vector<8x32xf32>
    %cst_9 = arith.constant 6.670090e-03 : f32
    %15 = vector.broadcast %cst_9 : f32 to vector<8x32xf32>
    %16 = arith.addf %14, %15 : vector<8x32xf32>
    %17 = arith.mulf %16, %12 : vector<8x32xf32>
    %cst_10 = arith.constant 0.0170881264 : f32
    %18 = vector.broadcast %cst_10 : f32 to vector<8x32xf32>
    %19 = arith.subf %17, %18 : vector<8x32xf32>
    %20 = arith.mulf %19, %12 : vector<8x32xf32>
    %cst_11 = arith.constant 0.0308918804 : f32
    %21 = vector.broadcast %cst_11 : f32 to vector<8x32xf32>
    %22 = arith.addf %20, %21 : vector<8x32xf32>
    %23 = arith.mulf %22, %12 : vector<8x32xf32>
    %cst_12 = arith.constant 0.0501743034 : f32
    %24 = vector.broadcast %cst_12 : f32 to vector<8x32xf32>
    %25 = arith.subf %23, %24 : vector<8x32xf32>
    %26 = arith.mulf %25, %12 : vector<8x32xf32>
    %cst_13 = arith.constant 0.0889789909 : f32
    %27 = vector.broadcast %cst_13 : f32 to vector<8x32xf32>
    %28 = arith.addf %26, %27 : vector<8x32xf32>
    %29 = arith.mulf %28, %12 : vector<8x32xf32>
    %cst_14 = arith.constant 0.214598805 : f32
    %30 = vector.broadcast %cst_14 : f32 to vector<8x32xf32>
    %31 = arith.subf %29, %30 : vector<8x32xf32>
    %32 = arith.mulf %31, %12 : vector<8x32xf32>
    %cst_15 = arith.constant 1.57079625 : f32
    %33 = vector.broadcast %cst_15 : f32 to vector<8x32xf32>
    %34 = arith.addf %32, %33 : vector<8x32xf32>
    %cst_16 = arith.constant 1.000000e+00 : f32
    %35 = vector.broadcast %cst_16 : f32 to vector<8x32xf32>
    %36 = arith.subf %35, %12 : vector<8x32xf32>
    %37 = math.sqrt %36 : vector<8x32xf32>
    %38 = arith.mulf %37, %34 : vector<8x32xf32>
    %cst_17 = arith.constant 0.000000e+00 : f32
    %39 = vector.broadcast %cst_17 : f32 to vector<8x32xf32>
    %40 = arith.cmpf olt, %11, %39 : vector<8x32xf32>
    %cst_18 = arith.constant 3.14159274 : f32
    %41 = vector.broadcast %cst_18 : f32 to vector<8x32xf32>
    %42 = arith.subf %41, %38 : vector<8x32xf32>
    %43 = arith.select %40, %42, %38 : vector<8x32xi1>, vector<8x32xf32>
    %c0_19 = arith.constant 0 : index
    %c0_20 = arith.constant 0 : index
    %44 = vector.load %arg5[%c0_19, %c0_20] : memref<8x32xf32, #tpu.memory_space<vmem>>, vector<8x32xf32>
    tpu.vector_store %arg5[%c0_19, %c0_20], %43 {strides = array<i32>} : memref<8x32xf32, #tpu.memory_space<vmem>>, vector<8x32xf32>,
    return
  }
  func.func @transform_0(%arg0: i32, %arg1: i32) -> (i32, i32) {
    %c0_i32 = arith.constant 0 : i32
    %c0_i32_0 = arith.constant 0 : i32
    return %arg1, %c0_i32 : i32, i32
  }
  func.func @transform_1(%arg0: i32, %arg1: i32) -> (i32, i32) {
    %c0_i32 = arith.constant 0 : i32
    %c0_i32_0 = arith.constant 0 : i32
    return %arg1, %c0_i32 : i32, i32
  }
  func.func @transform_2(%arg0: i32, %arg1: i32) -> (i32, i32) {
    %c0_i32 = arith.constant 0 : i32
    %c0_i32_0 = arith.constant 0 : i32
    return %arg0, %c0_i32 : i32, i32
  }
  func.func @transform_3(%arg0: i32, %arg1: i32) -> (i32, i32) {
    %c0_i32 = arith.constant 0 : i32
    return %arg1, %arg0 : i32, i32
  }
}

</mosaic_0001>

<bundles_post_ra>
// kernel: arcface_forward.1
= control target key start
LH: loop header
LB: loop body
LE: loop exit
PB: predicated region body
PF: predicated region fallthrough
CT: control target
= control target key end

     0   :  { %8 = vsyncpa [#allocation4], 0  ;;  %s356_s0 = inlined_call_operand.vmem [shape: f32[8,1], index: 0, kind: input, shape index: {}]   ;;  %s357_s1 = inlined_call_operand.vmem [shape: f32[8,64], index: 1, kind: input, shape index: {}]   ;;  %s358_s2 = inlined_call_operand.hbm [shape: f32[32,64], index: 2, kind: input, shape index: {}]   ;;  %s359_s3 = inlined_call_operand.hbm [shape: f32[8,32], index: 3, kind: output, shape index: {}]  }
   0x1   :  { %9 = vsyncpa [#allocation5], 0  ;;  %s18_s14 = sshll.u32 %s358_s2, 4  ;;  %s304_s15 = smov [#allocation3]   ;;  %s19_s14 = int_to_ptr.hbm [resolvable:$true] %s18_s14 }
   0x2   :  { %s20_s16 = sshll.u32 %s304_s15, 4  ;;  %s305_s17 = smov 128   ;;  %s21_s16 = int_to_ptr.vmem [resolvable:$true] %s20_s16 }
   0x3   :  { %s306_s18 = smov 8  }
   0x4   :  { %26 = dma.hbm_to_vmem [thread:$0]  %s19_s14, 512, %s21_s16, [#allocation4], %s305_s17, %s305_s17, %s306_s18  }
   0x5   :  { %300 = dma.done.wait [#allocation4], 512  }
   0x6   :  { %301 = vsyncadd [#allocation4], 4294966784  ;;  %v307_v0 = vmov 0   ;;  %v37_v1 = vld [vmem:[#allocation3 + $0x10] sm:$0xff]  ;;  %vm43_vm0 = vcmask 523264   ;;  %v35_v2 = vld [vmem:[#allocation3] sm:$0xff]  ;;  %v104_v34 = vlaneseq }
   0x7   :  { %239 = vset.pattern.permute.xlu2 %v307_v0  ;;  %240 = vset.pattern.permute.xlu0 %v307_v0  ;;  %v38_v3 = vld [vmem:[#allocation3 + $0x18] sm:$0xff]  ;;  %v41_v4 = vmul.f32 %v37_v1, %v37_v1  ;;  %v39_v5 = vmul.f32 %v35_v2, %v35_v2  ;;  %v36_v7 = vld [vmem:[#allocation3 + $0x8] sm:$0xff]  ;;  %vm109_vm13 = vcmask 130112   ;;  %vm113_vm14 = vcmask 195712   ;;  %s216_s24 = sshll.u32 %s359_s3, 4  ;;  %s217_s24 = int_to_ptr.hbm [resolvable:$true] %s216_s24 }
   0x8   :  { %226 = vmatpush.xpose.msk.msra.mxu0 %vm43_vm0, %v38_v3  ;;  %v163_v6 = vld [vmem:[%s356_s0] sm:$0xff]  ;;  %v42_v10 = vmul.f32 %v38_v3, %v38_v3  ;;  %v40_v11 = vmul.f32 %v36_v7, %v36_v7  ;;  %v105_v41 = vand.u32 127, %v104_v34  ;;  %vm117_vm15 = vcmask 261312  }
   0x9   :  { %166 = vperm.xlu2 %239, %v163_v6   ;;  %v50_v8 = vsel %vm43_vm0, %v41_v4, 0.0  ;;  %v44_v9 = vsel %vm43_vm0, %v39_v5, 0.0  ;;  %v122_v14 = vld [vmem:[%s357_s1] sm:$0xff]  ;;  %s308_s1 = smov [#allocation6]  }
   0xa   :  { %51 = vadd.xlane.f32.xlu1 %v50_v8  ;;  %45 = vadd.xlane.f32.xlu0 %v44_v9  ;;  %v53_v12 = vsel %vm43_vm0, %v42_v10, 0.0  ;;  %v47_v13 = vsel %vm43_vm0, %v40_v11, 0.0  ;;  %v107_v49 = vadd.s32 4294967288, %v105_v41  ;;  %v111_v50 = vadd.s32 4294967280, %v105_v41  ;;  %s214_s21 = sshll.u32 %s308_s1, 4  ;;  %s215_s21 = int_to_ptr.vmem [resolvable:$true] %s214_s21 }
   0xb   :  { %v115_v54 = vadd.s32 4294967272, %v105_v41 }
   0xc   :  { %227 = vmatpush.xpose.msk.msra.mxu0 %vm43_vm0, %v37_v1 }
  0x10   :  { %228 = vmatpush.xpose.msk.msra.mxu0 %vm43_vm0, %v36_v7 }
  0x12   :  { %54 = vadd.xlane.f32.xlu1 %v53_v12  ;;  %48 = vadd.xlane.f32.xlu0 %v47_v13 }
  0x14   :  { %229 = vmatpush.xpose.msk.msra.mxu0 %vm43_vm0, %v35_v2 }
  0x17   :  { %230 = vmatmul.msk.f32.vlgmr.msra.gmra.mxu0 %vm43_vm0, %v122_v14  ;;  %vm120_vm0 = vcmask 253952  }
  0x63   :  { %v167_v0 = vpop.permute.xlu2 %166 }
  0x7d   :  { %v52_v15 = vpop.xlane.xlu1 %51  ;;  %v46_v16 = vpop.xlane.xlu0 %45 }
  0x7e   :  { %v58_v17 = vmax.f32 %v52_v15, 1e-16  ;;  %v56_v18 = vmax.f32 %v46_v16, 1e-16 }
  0x80   :  { %242 = vrsqrt.f32 %v58_v17  ;;  %vm86_vm3 = vweird.f32 %v58_v17  ;;  %vm66_vm6 = vweird.f32 %v56_v18 }
  0x81   :  { %244 = vrsqrt.f32 %v56_v18 }
  0x85   :  { %v55_v19 = vpop.xlane.xlu1 %54  ;;  %v49_v20 = vpop.xlane.xlu0 %48 }
  0x86   :  { %v243_v21 = vpop.eup %242  ;;  %v59_v22 = vmax.f32 %v55_v19, 1e-16  ;;  %v57_v23 = vmax.f32 %v49_v20, 1e-16 }
  0x87   :  { %v245_v24 = vpop.eup %244  ;;  %v81_v25 = vmul.f32 %v243_v21, %v58_v17  ;;  %vm87_vm1 = vweird.f32 %v243_v21 }
  0x88   :  { %v61_v26 = vmul.f32 %v245_v24, %v56_v18  ;;  %246 = vrsqrt.f32 %v59_v22  ;;  %vm67_vm2 = vweird.f32 %v245_v24  ;;  %vm347_vm5 = vmor %vm86_vm3, %vm87_vm1  ;;  %vm96_vm9 = vweird.f32 %v59_v22 }
  0x89   :  { %v82_v27 = vmul.f32 %v243_v21, %v81_v25  ;;  %248 = vrsqrt.f32 %v57_v23  ;;  %vm68_vm8 = vmor %vm66_vm6, %vm67_vm2  ;;  %vm76_vm11 = vweird.f32 %v57_v23  ;;  %vm207_vm3 = vcmask 261120  }
  0x8a   :  { %v62_v28 = vmul.f32 %v245_v24, %v61_v26 }
  0x8b   :  { %v83_v30 = vmul.f32 0.5, %v82_v27 }
  0x8c   :  { %v63_v29 = vmul.f32 0.5, %v62_v28 }
  0x8d   :  { %v84_v37 = vsub.f32 1.5, %v83_v30 }
  0x8e   :  { %v247_v31 = vpop.eup %246  ;;  %v64_v35 = vsub.f32 1.5, %v63_v29 }
  0x8f   :  { %v249_v32 = vpop.eup %248  ;;  %v91_v33 = vmul.f32 %v247_v31, %v59_v22  ;;  %v85_v44 = vmul.f32 %v243_v21, %v84_v37  ;;  %vm97_vm4 = vweird.f32 %v247_v31 }
  0x90   :  { %v71_v36 = vmul.f32 %v249_v32, %v57_v23  ;;  %v65_v42 = vmul.f32 %v245_v24, %v64_v35  ;;  %vm77_vm7 = vweird.f32 %v249_v32  ;;  %vm98_vm10 = vmor %vm96_vm9, %vm97_vm4 }
  0x91   :  { %v92_v38 = vmul.f32 %v247_v31, %v91_v33  ;;  %v89_v53 = vsel %vm347_vm5, %v243_v21, %v85_v44  ;;  %vm78_vm12 = vmor %vm76_vm11, %vm77_vm7 }
  0x92   :  { %v72_v39 = vmul.f32 %v249_v32, %v71_v36  ;;  %v69_v51 = vsel %vm68_vm8, %v245_v24, %v65_v42  ;;  %v112_v59 = vperm.slane %v89_v53, %v111_v50 }
  0x93   :  { %v93_v40 = vmul.f32 0.5, %v92_v38  ;;  %v106_v57 = vperm.slane %v69_v51, %v105_v41 }
  0x94   :  { %v73_v43 = vmul.f32 0.5, %v72_v39  ;;  %v160_v1 = vpop.f32.mrf.mxu0 }
  0x95   :  { %v94_v45 = vsub.f32 1.5, %v93_v40  ;;  %v169_v2 = vmul.f32 %v167_v0, %v160_v1 }
  0x96   :  { %v74_v47 = vsub.f32 1.5, %v73_v43 }
  0x97   :  { %v95_v48 = vmul.f32 %v247_v31, %v94_v45 }
  0x98   :  { %v75_v52 = vmul.f32 %v249_v32, %v74_v47 }
  0x99   :  { %v99_v55 = vsel %vm98_vm10, %v247_v31, %v95_v48 }
  0x9a   :  { %v79_v56 = vsel %vm78_vm12, %v249_v32, %v75_v52  ;;  %v116_v60 = vperm.slane %v99_v55, %v115_v54 }
  0x9b   :  { %v108_v58 = vperm.slane %v79_v56, %v107_v49 }
  0x9d   :  { %v110_v61 = vsel %vm109_vm13, %v108_v58, %v106_v57 }
  0x9e   :  { %v114_v62 = vsel %vm113_vm14, %v112_v59, %v110_v61 }
  0x9f   :  { %v118_v63 = vsel %vm117_vm15, %v116_v60, %v114_v62 }
  0xa0   :  { %121 = vst.msk [vmem:[#allocation2] sm:$0x1] %vm120_vm0, %v118_v63 }
  0xa7   :  { %v241_v3 = vld [vmem:[#allocation2] ss:$0 sm:$0xff] }
  0xa8   :  { %v174_v4 = vmul.f32 %v241_v3, %v169_v2 }
  0xaa   :  { %v175_v5 = vand.u32 2147483647, %v174_v4  ;;  %vm204_vm4 = vcmp.lt.f32.partialorder %v174_v4, 0.0 }
  0xac   :  { %v190_v6 = vsub.f32 1.0, %v175_v5  ;;  %v176_v7 = vmul.f32 -0.0012624911, %v175_v5 }
  0xae   :  { %v177_v8 = vadd.f32 0.00667009, %v176_v7  ;;  %250 = vrsqrt.f32 %v190_v6  ;;  %vm198_vm1 = vcmp.eq.f32.partialorder %v190_v6, inf  ;;  %v201_v28 = vand.u32 2147483648, %v190_v6 }
  0xaf   :  { %vm200_vm2 = vcmp.eq.f32.partialorder %v190_v6, 0.0 }
  0xb0   :  { %v178_v9 = vmul.f32 %v177_v8, %v175_v5 }
  0xb2   :  { %v231_v10 = vadd.f32 -0.017088126, %v178_v9 }
  0xb4   :  { %v251_v11 = vpop.eup %250  ;;  %v180_v12 = vmul.f32 %v231_v10, %v175_v5 }
  0xb5   :  { %v192_v13 = vmul.f32 %v251_v11, %v190_v6 }
  0xb6   :  { %v181_v14 = vadd.f32 0.03089188, %v180_v12 }
  0xb7   :  { %v193_v15 = vmul.f32 %v251_v11, %v192_v13 }
  0xb8   :  { %v182_v16 = vmul.f32 %v181_v14, %v175_v5 }
  0xb9   :  { %v194_v17 = vmul.f32 0.5, %v193_v15 }
  0xba   :  { %v232_v18 = vadd.f32 -0.050174303, %v182_v16 }
  0xbb   :  { %v195_v19 = vsub.f32 1.5, %v194_v17 }
  0xbc   :  { %v184_v20 = vmul.f32 %v232_v18, %v175_v5 }
  0xbd   :  { %v196_v21 = vmul.f32 %v251_v11, %v195_v19 }
  0xbe   :  { %v185_v22 = vadd.f32 0.08897899, %v184_v20 }
  0xbf   :  { %v197_v24 = vmul.f32 %v196_v21, %v190_v6 }
  0xc0   :  { %v186_v23 = vmul.f32 %v185_v22, %v175_v5 }
  0xc1   :  { %v199_v27 = vsel %vm198_vm1, %v190_v6, %v197_v24 }
  0xc2   :  { %v233_v25 = vadd.f32 -0.2145988, %v186_v23  ;;  %v202_v30 = vsel %vm200_vm2, %v201_v28, %v199_v27 }
  0xc4   :  { %v188_v26 = vmul.f32 %v233_v25, %v175_v5 }
  0xc6   :  { %v189_v29 = vadd.f32 1.5707963, %v188_v26 }
  0xc8   :  { %v203_v31 = vmul.f32 %v202_v30, %v189_v29 }
  0xca   :  { %v205_v32 = vsub.f32 3.1415927, %v203_v31 }
  0xcc   :  { %v206_v33 = vsel %vm204_vm4, %v205_v32, %v203_v31 }
  0xcd   :  { %208 = vst.msk [vmem:[#allocation6] sm:$0xff] %vm207_vm3, %v206_v33 }
  0xce   :  { %219 = dma.vmem_to_hbm [thread:$0]  %s215_s21, 128, %s217_s24, [#allocation5]  }
  0xcf   :  { %302 = dma.done.wait [#allocation5], 128  }
  0xd0   :  { %303 = vsyncadd [#allocation5], 4294967168 }
  0xd1   :  { %224 = vsyncpa [#allocation4], 1 }
  0xd2   :  { %225 = vsyncpa [#allocation5], 1 }

</bundles_post_ra>
